<compile_context>
chip_gen: v7x
topology: tpu7x:2x2x1
jax: 0.10.0
libtpu: 0.0.40
codegen_flags: <defaults>
</compile_context>

<pallas_src>
import functools

import jax
import jax.numpy as jnp
from jax.experimental import pallas as pl
from jax.experimental.pallas import tpu as pltpu


def _round_up(x, m):
    return ((x + m - 1) // m) * m


def attention_kernel(hidden_ref, enc_ref, w_h_ref, w_e_ref, b_ref, v_ref, ctx_ref,
                     *, valid_s):
    """One batch tile (BT rows) per grid step.

    hidden_ref: (BT, H)      decoder hidden states
    enc_ref:    (BT, Sp, E)  encoder outputs (E = 2H), Sp = S padded to sublane pack
    w_h_ref:    (H, Hp)      attn-weight slice acting on `hidden`  (Hp = H padded to 128)
    w_e_ref:    (E, Hp)      attn-weight slice acting on encoder outputs
    b_ref:      (1, Hp)      attn bias
    v_ref:      (1, Hp)      scoring vector (row layout)
    ctx_ref:    (BT, E)      output context rows (lane-dense)
    """
    bt, sp, e = enc_ref.shape
    enc = enc_ref[...]                      # (BT, Sp, E), native dtype (f32 or bf16)
    h = hidden_ref[...]                     # (BT, H),    native dtype

    # attn(cat([hidden, enc], -1)) == hidden @ W_h + enc @ W_e + b.
    # One fat MXU matmul for the whole batch tile (M = BT*Sp); the reshape is a
    # layout no-op because Sp is a multiple of the sublane pack.
    e_proj = jnp.dot(enc.reshape(bt * sp, e), w_e_ref[...],
                     preferred_element_type=jnp.float32)             # (BT*Sp, Hp)

    # Fold the bias into the small (BT, Hp) projection instead of broadcasting
    # it over the big (BT, Sp, Hp) tensor (S x fewer VALU adds, same result).
    hb = (jnp.dot(h, w_h_ref[...], preferred_element_type=jnp.float32)
          + b_ref[...].astype(jnp.float32))                          # (BT, Hp)

    energies = jnp.tanh(e_proj.reshape(bt, sp, -1) + hb[:, None, :])  # (BT, Sp, Hp) f32

    # v(energies): lane reduce instead of an N=1 matmul; scores lane-major.
    # Zero-padded Hp columns contribute exactly 0 (tanh(0) * 0).
    scores = jnp.sum(energies * v_ref[...].astype(jnp.float32), axis=-1)  # (BT, Sp)

    if sp != valid_s:
        # Padded sequence positions (zero keys) must not receive attention mass.
        kv = jax.lax.broadcasted_iota(jnp.int32, (1, sp), 1)
        scores = jnp.where(kv < valid_s, scores, -1e30)

    # Softmax over the sequence axis (PyTorch dim=1), max-stabilized; exact
    # denominator (the previous approx reciprocal cost accuracy for no gain —
    # it only touches a (BT, Sp) tensor).
    m = jnp.max(scores, axis=-1, keepdims=True)
    ex = jnp.exp(scores - m)
    weights = ex / jnp.sum(ex, axis=-1, keepdims=True)               # (BT, Sp) f32

    # context = sum_s weights[b, s] * enc[b, s, :] as a batched MXU matmul in
    # the encoder's native dtype with f32 accumulation — no f32 copy of the
    # encoder tile and no large VPU multiply (MXU is otherwise idle here).
    ctx = jnp.einsum("bqs,bse->bqe",
                     weights[:, None, :].astype(enc.dtype), enc,
                     preferred_element_type=jnp.float32)             # (BT, 1, E) f32
    ctx_ref[...] = ctx[:, 0, :].astype(ctx_ref.dtype)


def attention_forward(hidden, encoder_outputs, w_attn, b_attn, w_v,
                      *, block_b=None, vmem_budget_bytes=6 << 20,
                      vmem_limit_bytes=32 << 20):
    """hidden: (B, H); encoder_outputs: (B, S, E) with E = 2H;
    w_attn: (H+E, H) [= PyTorch attn.weight.T]; b_attn: (H,); w_v: (H, 1).
    Returns context of shape (B, 1, E), matching the PyTorch module."""
    B, H = hidden.shape
    _, S, E = encoder_outputs.shape
    assert w_attn.shape == (H + E, H)
    in_dtype = encoder_outputs.dtype
    itemsize = jnp.dtype(in_dtype).itemsize

    # --- Weight prep (plain JAX glue) ---------------------------------------
    # Split the concat weight; zero-pad the projection's output dim H -> Hp
    # (multiple of 128) so the MXU N dim and every (.., H) intermediate is
    # lane-dense.  Padded columns give tanh(0)=0 and a 0 in v -> exact no-op.
    Hp = _round_up(H, 128)
    w_h = w_attn[:H, :]                  # (H, H)  acts on hidden
    w_e = w_attn[H:, :]                  # (E, H)  acts on encoder outputs
    b2d = b_attn.reshape(1, H)
    v_row = w_v.reshape(1, H)
    if Hp != H:
        w_h = jnp.pad(w_h, ((0, 0), (0, Hp - H)))
        w_e = jnp.pad(w_e, ((0, 0), (0, Hp - H)))
        b2d = jnp.pad(b2d, ((0, 0), (0, Hp - H)))
        v_row = jnp.pad(v_row, ((0, 0), (0, Hp - H)))

    # --- Sequence padding -----------------------------------------------------
    # Pad S to the sublane pack (8 for f32, 16 for bf16) so the in-kernel
    # (BT,Sp,E) <-> (BT*Sp,E) reshapes stay layout no-ops; padded keys are
    # masked off inside the kernel.
    pack = max(8, 32 // itemsize)
    Sp = _round_up(S, pack)
    if Sp != S:
        encoder_outputs = jnp.pad(encoder_outputs, ((0, 0), (0, Sp - S), (0, 0)))
    # TODO(synk): for very long S, add a sequence grid axis with an online
    # (flash-style) softmax instead of growing the per-tile encoder block.

    # --- Batch tile size ------------------------------------------------------
    # Budget against the full per-tile VMEM footprint (double-buffered enc
    # input + f32 e_proj/energies intermediates + output), not just the raw
    # encoder block, so the same sizing holds on v5e (16 MiB scoped default),
    # v6e (32 MiB scoped / 128 MiB physical) and v7x (64 MiB physical).
    if block_b is None:
        per_row = (2 * Sp * E * itemsize        # enc block, double-buffered
                   + 2 * Sp * Hp * 4            # e_proj + energies (f32)
                   + Sp * Hp * itemsize         # cast / temp headroom
                   + 2 * E * itemsize           # ctx rows, double-buffered
                   + 16 * Sp + 8 * Hp)          # scores / exp / weights / hb
        block_b = max(1, vmem_budget_bytes // max(per_row, 1))
        # Prefer >= 4 grid steps (2 per v7x TensorCore), else >= 2, so the DMA
        # pipeline always has an iteration to overlap with.
        for min_steps in (4, 2):
            if B >= 8 * min_steps:
                block_b = min(block_b, B // min_steps)
                break
        block_b = min(block_b, 512)
    # Sublane-align the batch tile; pad the batch to a whole number of tiles.
    block_b = max(8, (min(block_b, _round_up(B, 8)) // 8) * 8)
    Bp = _round_up(B, block_b)
    if Bp != B:
        # Padded batch rows run a benign softmax over tanh(b)-derived scores
        # (finite; masked-S safe) and are sliced off after the kernel.
        hidden = jnp.pad(hidden, ((0, Bp - B), (0, 0)))
        encoder_outputs = jnp.pad(encoder_outputs, ((0, Bp - B), (0, 0), (0, 0)))
    num_steps = Bp // block_b

    cost = pl.CostEstimate(
        flops=int(2 * Bp * Sp * E * Hp          # enc @ W_e
                  + 2 * Bp * H * Hp             # hidden @ W_h
                  + 2 * Bp * Sp * Hp            # scoring reduce
                  + 2 * Bp * Sp * E),           # context matmul
        transcendentals=int(Bp * Sp * Hp + Bp * Sp),   # tanh + exp
        bytes_accessed=int(Bp * H * itemsize + Bp * Sp * E * itemsize
                           + (H + E + 2) * Hp * itemsize + Bp * E * itemsize
                           + 2 * Bp * Sp * Hp * 4),    # f32 intermediates
    )

    kernel = functools.partial(attention_kernel, valid_s=S)

    ctx2d = pl.pallas_call(
        kernel,
        out_shape=jax.ShapeDtypeStruct((Bp, E), in_dtype),
        grid_spec=pltpu.PrefetchScalarGridSpec(
            num_scalar_prefetch=0,
            grid=(num_steps,),
            in_specs=[
                pl.BlockSpec((block_b, H), lambda b: (b, 0)),          # hidden
                pl.BlockSpec((block_b, Sp, E), lambda b: (b, 0, 0)),   # encoder outputs
                pl.BlockSpec((H, Hp), lambda b: (0, 0)),               # w_h
                pl.BlockSpec((E, Hp), lambda b: (0, 0)),               # w_e
                pl.BlockSpec((1, Hp), lambda b: (0, 0)),               # bias
                pl.BlockSpec((1, Hp), lambda b: (0, 0)),               # v row
            ],
            out_specs=pl.BlockSpec((block_b, E), lambda b: (b, 0)),    # lane-dense rows
        ),
        compiler_params=pltpu.CompilerParams(
            dimension_semantics=("parallel",),
            vmem_limit_bytes=vmem_limit_bytes),
        cost_estimate=cost,
    )(hidden, encoder_outputs, w_h, w_e, b2d, v_row)

    # Restore PyTorch's (B, 1, E) shape outside the kernel (free reshape).
    return ctx2d[:B].reshape(B, 1, E)


def attention_reference(hidden, encoder_outputs, w_attn, b_attn, w_v):
    """Pure-JAX f32 reference mirroring the PyTorch forward.  Uses highest-
    precision matmuls so it is a trustworthy baseline on TPU (the previous
    failure came from comparing against a default-precision reference)."""
    B, S, E = encoder_outputs.shape
    h = hidden.astype(jnp.float32)
    enc = encoder_outputs.astype(jnp.float32)
    h_exp = jnp.broadcast_to(h[:, None, :], (B, S, h.shape[1]))
    attn_in = jnp.concatenate([h_exp, enc], axis=2)                       # (B, S, 3H)
    energies = jnp.tanh(
        jnp.einsum("bsf,fh->bsh", attn_in, w_attn.astype(jnp.float32),
                   precision="highest")
        + b_attn.astype(jnp.float32))                                     # (B, S, H)
    scores = jnp.einsum("bsh,ho->bso", energies, w_v.astype(jnp.float32),
                        precision="highest")                              # (B, S, 1)
    weights = jax.nn.softmax(scores, axis=1)                              # (B, S, 1)
    context = jnp.einsum("bso,bse->boe", weights, enc, precision="highest")
    return context


if __name__ == "__main__":
    # Small but layout-friendly shapes: E = 2H = 128 keeps the encoder features
    # and the context output lane-dense; the wrapper pads H=64 -> 128 for the
    # projection's N dim.  B=16 with the auto block_b=8 gives 2 grid steps.
    B, S, H = 16, 16, 64
    E = 2 * H

    key = jax.random.PRNGKey(0)
    k1, k2, k3, k4, k5 = jax.random.split(key, 5)

    hidden = jax.random.normal(k1, (B, H), dtype=jnp.float32)
    encoder_outputs = jax.random.normal(k2, (B, S, E), dtype=jnp.float32)

    # Parameter shapes from nn.Linear(3H, H) and nn.Linear(H, 1), stored (in, out).
    w_attn = jax.random.normal(k3, (H + E, H), dtype=jnp.float32) * 0.1
    b_attn = jax.random.normal(k4, (H,), dtype=jnp.float32) * 0.1
    w_v = jax.random.normal(k5, (H, 1), dtype=jnp.float32) * 0.1

    ref = attention_reference(hidden, encoder_outputs, w_attn, b_attn, w_v)

    # f32 path.  Tolerance covers the backend's default f32-matmul pass
    # decomposition (the kernel accumulates in f32; products may be rounded
    # to bf16 passes depending on generation / default precision).
    ctx = attention_forward(hidden, encoder_outputs, w_attn, b_attn, w_v)
    ctx = jax.block_until_ready(ctx)
    assert ctx.shape == (B, 1, E)
    assert jnp.allclose(ctx, ref, atol=1e-2, rtol=1e-2), (
        "f32 max abs err %e" % float(jnp.max(jnp.abs(ctx - ref))))

    # bf16 MXU-input path (halves DMA bytes, f32 accumulation inside).
    # Compare against the reference evaluated on the SAME quantized inputs —
    # this isolates kernel-internal error from input quantization and is a
    # much tighter regression check than a loose comparison vs. the f32 ref.
    to_bf16 = lambda a: a.astype(jnp.bfloat16)
    h16, e16, w16, b16, v16 = map(to_bf16,
                                  (hidden, encoder_outputs, w_attn, b_attn, w_v))
    ctx_bf16 = attention_forward(h16, e16, w16, b16, v16)
    ctx_bf16 = jax.block_until_ready(ctx_bf16).astype(jnp.float32)
    assert ctx_bf16.shape == (B, 1, E)
    ref_q = attention_reference(h16, e16, w16, b16, v16)
    assert jnp.allclose(ctx_bf16, ref_q, atol=1e-2, rtol=1e-2), (
        "bf16 (quantized-input) max abs err %e"
        % float(jnp.max(jnp.abs(ctx_bf16 - ref_q))))
    assert jnp.allclose(ctx_bf16, ref, atol=5e-2, rtol=5e-2)

    print("KERNEL_OK")
</pallas_src>

<mosaic_0001>
module attributes {stable_mosaic.version = 11 : i64} {
  func.func @attention_kernel(%arg0: i32, %arg1: memref<8x64xf32, #tpu.memory_space<vmem>>, %arg2: memref<8x16x128xf32, #tpu.memory_space<vmem>>, %arg3: memref<64x128xf32, #tpu.memory_space<vmem>>, %arg4: memref<128x128xf32, #tpu.memory_space<vmem>>, %arg5: memref<1x128xf32, #tpu.memory_space<vmem>>, %arg6: memref<1x128xf32, #tpu.memory_space<vmem>>, %arg7: memref<8x128xf32, #tpu.memory_space<vmem>>) attributes {dimension_semantics = [#tpu.dimension_semantics<parallel>], iteration_bounds = array<i64: 2>, scalar_prefetch = 0 : i64, scratch_operands = 0 : i64, tpu.core_type = #tpu.core_type<tc>, window_params = [{transform_indices = @transform_0, window_bounds = array<i64: 8, 64>}, {transform_indices = @transform_1, window_bounds = array<i64: 8, 16, 128>}, {pipeline_mode = #tpu.pipeline_mode<synchronous>, transform_indices = @transform_2, window_bounds = array<i64: 64, 128>}, {pipeline_mode = #tpu.pipeline_mode<synchronous>, transform_indices = @transform_3, window_bounds = array<i64: 128, 128>}, {pipeline_mode = #tpu.pipeline_mode<synchronous>, transform_indices = @transform_4, window_bounds = array<i64: 1, 128>}, {pipeline_mode = #tpu.pipeline_mode<synchronous>, transform_indices = @transform_5, window_bounds = array<i64: 1, 128>}, {transform_indices = @transform_6, window_bounds = array<i64: 8, 128>}]} {
    %c0 = arith.constant 0 : index
    %c0_0 = arith.constant 0 : index
    %c0_1 = arith.constant 0 : index
    %0 = vector.load %arg2[%c0, %c0_0, %c0_1] : memref<8x16x128xf32, #tpu.memory_space<vmem>>, vector<8x16x128xf32>
    %c0_2 = arith.constant 0 : index
    %c0_3 = arith.constant 0 : index
    %1 = vector.load %arg1[%c0_2, %c0_3] : memref<8x64xf32, #tpu.memory_space<vmem>>, vector<8x64xf32>
    %2 = vector.shape_cast %0 : vector<8x16x128xf32> to vector<128x128xf32>
    %c0_4 = arith.constant 0 : index
    %c0_5 = arith.constant 0 : index
    %3 = vector.load %arg4[%c0_4, %c0_5] : memref<128x128xf32, #tpu.memory_space<vmem>>, vector<128x128xf32>
    %cst = arith.constant dense<0.000000e+00> : vector<128x128xf32>
    %4 = tpu.matmul %2, %3, %cst {dimension_numbers = #tpu.dot_dimension_numbers<[1], [0], [0], [1], [0, 0, 1, 1], [], []>} : vector<128x128xf32>, vector<128x128xf32>, vector<128x128xf32> -> vector<128x128xf32>
    %c0_6 = arith.constant 0 : index
    %c0_7 = arith.constant 0 : index
    %5 = vector.load %arg3[%c0_6, %c0_7] : memref<64x128xf32, #tpu.memory_space<vmem>>, vector<64x128xf32>
    %cst_8 = arith.constant dense<0.000000e+00> : vector<8x128xf32>
    %6 = tpu.matmul %1, %5, %cst_8 {dimension_numbers = #tpu.dot_dimension_numbers<[1], [0], [0], [1], [0, 0, 1, 1], [], []>} : vector<8x64xf32>, vector<64x128xf32>, vector<8x128xf32> -> vector<8x128xf32>
    %c0_9 = arith.constant 0 : index
    %c0_10 = arith.constant 0 : index
    %7 = vector.load %arg5[%c0_9, %c0_10] : memref<1x128xf32, #tpu.memory_space<vmem>>, vector<1x128xf32>
    %8 = vector.broadcast %7 : vector<1x128xf32> to vector<8x128xf32>
    %9 = arith.addf %6, %8 : vector<8x128xf32>
    %10 = vector.shape_cast %4 : vector<128x128xf32> to vector<8x16x128xf32>
    %11 = vector.shape_cast %9 : vector<8x128xf32> to vector<8x1x128xf32>
    %12 = vector.broadcast %11 : vector<8x1x128xf32> to vector<8x16x128xf32>
    %13 = arith.addf %10, %12 : vector<8x16x128xf32>
    %14 = math.tanh %13 : vector<8x16x128xf32>
    %c0_11 = arith.constant 0 : index
    %c0_12 = arith.constant 0 : index
    %15 = vector.load %arg6[%c0_11, %c0_12] : memref<1x128xf32, #tpu.memory_space<vmem>>, vector<1x128xf32>
    %16 = vector.shape_cast %15 : vector<1x128xf32> to vector<1x1x128xf32>
    %17 = vector.broadcast %16 : vector<1x1x128xf32> to vector<8x16x128xf32>
    %18 = arith.mulf %14, %17 : vector<8x16x128xf32>
    %cst_13 = arith.constant dense<0.000000e+00> : vector<8x16xf32>
    %19 = vector.multi_reduction <add>, %18, %cst_13 [2] : vector<8x16x128xf32> to vector<8x16xf32>
    %cst_14 = arith.constant dense<0xFF800000> : vector<8xf32>
    %20 = vector.multi_reduction <maximumf>, %19, %cst_14 [1] : vector<8x16xf32> to vector<8xf32>
    %21 = vector.shape_cast %20 : vector<8xf32> to vector<8x1xf32>
    %22 = vector.broadcast %21 : vector<8x1xf32> to vector<8x16xf32>
    %23 = arith.subf %19, %22 : vector<8x16xf32>
    %24 = math.exp %23 : vector<8x16xf32>
    %cst_15 = arith.constant dense<0.000000e+00> : vector<8xf32>
    %25 = vector.multi_reduction <add>, %24, %cst_15 [1] : vector<8x16xf32> to vector<8xf32>
    %26 = vector.shape_cast %25 : vector<8xf32> to vector<8x1xf32>
    %27 = vector.broadcast %26 : vector<8x1xf32> to vector<8x16xf32>
    %28 = arith.divf %24, %27 : vector<8x16xf32>
    %29 = vector.shape_cast %28 : vector<8x16xf32> to vector<8x1x16xf32>
    "tpu.trace_start"() <{level = 10 : i32, message = "bqs,bse->bqe"}> : () -> ()
    %cst_16 = arith.constant dense<0.000000e+00> : vector<8x1x128xf32>
    %30 = tpu.matmul %29, %0, %cst_16 {dimension_numbers = #tpu.dot_dimension_numbers<[2], [1], [1], [2], [0, 0, 0, 1, 1, 2], [0], [0]>} : vector<8x1x16xf32>, vector<8x16x128xf32>, vector<8x1x128xf32> -> vector<8x1x128xf32>
    "tpu.trace_stop"() : () -> ()
    %31 = vector.shape_cast %30 : vector<8x1x128xf32> to vector<8x128xf32>
    %c0_17 = arith.constant 0 : index
    %c0_18 = arith.constant 0 : index
    %32 = vector.load %arg7[%c0_17, %c0_18] : memref<8x128xf32, #tpu.memory_space<vmem>>, vector<8x128xf32>
    tpu.vector_store %arg7[%c0_17, %c0_18], %31 {strides = array<i32>} : memref<8x128xf32, #tpu.memory_space<vmem>>, vector<8x128xf32>,
    return
  }
  func.func @transform_0(%arg0: i32) -> (i32, i32) {
    %c0_i32 = arith.constant 0 : i32
    %c0_i32_0 = arith.constant 0 : i32
    return %arg0, %c0_i32 : i32, i32
  }
  func.func @transform_1(%arg0: i32) -> (i32, i32, i32) {
    %c0_i32 = arith.constant 0 : i32
    %c0_i32_0 = arith.constant 0 : i32
    %c0_i32_1 = arith.constant 0 : i32
    return %arg0, %c0_i32, %c0_i32_0 : i32, i32, i32
  }
  func.func @transform_2(%arg0: i32) -> (i32, i32) {
    %c0_i32 = arith.constant 0 : i32
    %c0_i32_0 = arith.constant 0 : i32
    %c0_i32_1 = arith.constant 0 : i32
    return %c0_i32, %c0_i32_0 : i32, i32
  }
  func.func @transform_3(%arg0: i32) -> (i32, i32) {
    %c0_i32 = arith.constant 0 : i32
    %c0_i32_0 = arith.constant 0 : i32
    %c0_i32_1 = arith.constant 0 : i32
    return %c0_i32, %c0_i32_0 : i32, i32
  }
  func.func @transform_4(%arg0: i32) -> (i32, i32) {
    %c0_i32 = arith.constant 0 : i32
    %c0_i32_0 = arith.constant 0 : i32
    %c0_i32_1 = arith.constant 0 : i32
    return %c0_i32, %c0_i32_0 : i32, i32
  }
  func.func @transform_5(%arg0: i32) -> (i32, i32) {
    %c0_i32 = arith.constant 0 : i32
    %c0_i32_0 = arith.constant 0 : i32
    %c0_i32_1 = arith.constant 0 : i32
    return %c0_i32, %c0_i32_0 : i32, i32
  }
  func.func @transform_6(%arg0: i32) -> (i32, i32) {
    %c0_i32 = arith.constant 0 : i32
    %c0_i32_0 = arith.constant 0 : i32
    return %arg0, %c0_i32 : i32, i32
  }
}

</mosaic_0001>

<bundles_post_ra>
// kernel: tpu_custom_call.1
= control target key start
LH: loop header
LB: loop body
LE: loop exit
PB: predicated region body
PF: predicated region fallthrough
CT: control target
= control target key end

     0   :  { %s3504_s0 = inlined_call_operand.hbm [shape: f32[16,64], index: 0, kind: input, shape index: {}]   ;;  %s3505_s1 = inlined_call_operand.hbm [shape: f32[16,16,128], index: 1, kind: input, shape index: {}]   ;;  %s3506_s2 = inlined_call_operand.hbm [shape: f32[64,128], index: 2, kind: input, shape index: {}]   ;;  %s3507_s3 = inlined_call_operand.hbm [shape: f32[128,128], index: 3, kind: input, shape index: {}]   ;;  %s3508_s4 = inlined_call_operand.vmem [shape: f32[1,128], index: 4, kind: input, shape index: {}]   ;;  %s3509_s5 = inlined_call_operand.vmem [shape: f32[1,128], index: 5, kind: input, shape index: {}]   ;;  %s3510_s6 = inlined_call_operand.hbm [shape: f32[16,128], index: 6, kind: output, shape index: {}]  }
   0x1   :  { %3521 = sst [smem:[#allocation16_spill]] %s3504_s0 }
   0x2   :  { %3522 = sst [smem:[#allocation17_spill]] %s3506_s2 }
   0x3   :  { %11 = vsyncpa [#allocation3], 0 }
   0x4   :  { %13 = vsyncpa [#allocation3 + $0x1], 0 }
   0x5   :  { %14 = vsyncpa [#allocation6], 0 }
   0x6   :  { %16 = vsyncpa [#allocation6 + $0x1], 0 }
   0x7   :  { %17 = vsyncpa [#allocation9], 0 }
   0x8   :  { %18 = vsyncpa [#allocation4], 0 }
   0x9   :  { %20 = vsyncpa [#allocation4 + $0x1], 0  ;;  %s2758_s21 = smov 0   ;;  %s2760_s22 = smov 0  }
   0xa   :  { %s2762_s23 = smov 0   ;;  %s2764_s24 = smov 0  }
   0xb LB: > { %s2779_s25 = sadd.s32 4294967295, %s2709_s24   ;;  %s2056_s26 = sadd.s32 4294967294, %s2709_s24   ;;  %s2709_s24 = sphi %s2764_s24, %s3556_s24   ;;  %s2705_s23 = sphi %s2762_s23, %s3555_s23   ;;  %s2701_s22 = sphi %s2760_s22, %s3554_s22   ;;  %s2697_s21 = sphi %s2758_s21, %s3553_s21  }
   0xc   : > { %p46_p0 = scmp.ne.s32.totalorder %s2701_s22, %s2697_s21  ;;  %p3511_p1 = scmp.eq.s32.totalorder %s2779_s25, 0 }
   0xd   : > { %p186_p3 = scmp.eq.s32.totalorder %s2056_s26, 1  ;;  %p2057_p5 = scmp.ge.s32.totalorder %s2709_s24, 1 }
   0xe   : > { %p2788_p4 = por %p3511_p1, %p46_p0  ;;  %p193_p7 = scmp.lt.s32.totalorder %s2709_s24, 3 }
   0xf   : > { %p2793_p6 = por %p186_p3, %p46_p0  ;;  %s2711_s30 = smov [#allocation7]  }
  0x10   : > { %s3523_s27 = scalar_select %p2788_p4, 1, 0 }
  0x11   : > { %s3524_s28 = scalar_select %p2793_p6, 1, 0 }
  0x12   : > { %p2798_p8 = pnand %p2057_p5, %p193_p7  ;;  %s205_s7 = sshll.u32 %s2711_s30, 4  ;;  %s2802_s7 = int_to_ptr.vmem [resolvable:$true] %s205_s7 }
  0x13   : > { %s2712_s9 = smov [#allocation8]   ;;  %s3527_s2 = sld [smem:[#allocation17_spill]] }
  0x14   : > { %p2368_p9 = pneg %p2798_p8  ;;  %s218_s10 = sshll.u32 %s2712_s9, 4  ;;  %s2813_s10 = int_to_ptr.vmem [resolvable:$true] %s218_s10 }
  0x16   : > { %p2809_p11 = pnand %p2368_p9, %p3511_p1 }
  0x18   : > { %p2517_p13 = pneg %p2809_p11 }
  0x19   : > { %s2515_s13 = scalar_lea.hbm %s3527_s2, 1024 }
  0x1a   : > { %p2516_p12 = scmp.ne.s32.totalorder %s3527_s2, %s2515_s13  ;;  %p2522_p5 = scmp.lt.u32.totalorder %s2515_s13, %s3527_s2 }
  0x1c   : > { %p2518_p0 = pnand %p2517_p13, %p2516_p12 }
  0x1e   : > { %p2519_p3 = pneg %p2518_p0 }
  0x20   : > { %p2524_p7 = pnand %p2522_p5, %p2519_p3 }
  0x22   : > { %2527 = shalt.err (!%p2524_p7)
}
  0x23   : > { %s2528_s18 = scalar_lea.vmem %s2802_s7, 1024  ;;  %p2536_p2 = scmp.lt.s32.totalorder %s2802_s7, %s2802_s7 }
  0x24   : > { %p2529_p9 = scmp.ne.s32.totalorder %s2802_s7, %s2528_s18  ;;  %p2537_p12 = scmp.lt.s32.totalorder %s2528_s18, %s2528_s18 }
  0x26   : > { %p2531_p10 = pnand %p2529_p9, %p2517_p13  ;;  %p2538_p0 = por %p2537_p12, %p2536_p2 }
  0x28   : > { %p2532_p1 = pneg %p2531_p10 }
  0x2a   : > { %p2539_p6 = pnand %p2538_p0, %p2532_p1 }
  0x2c   : > { %2542 = shalt.err (!%p2539_p6)
}
  0x2d   : > { %s3512_s19 = smov 128   ;;  %s3513_s20 = smov 8  }
  0x2e   : > { %2371 = dma.hbm_to_vmem [thread:$0]  (!%p2809_p11), %s3527_s2, 1024, %s2802_s7, [#allocation6], %s3512_s19, %s3512_s19, %s3513_s20  }
  0x2f   : > { %s2543_s12 = scalar_lea.hbm %s3507_s3, 2048 }
  0x30   : > { %p2544_p1 = scmp.ne.s32.totalorder %s3507_s3, %s2543_s12  ;;  %p2550_p10 = scmp.lt.u32.totalorder %s2543_s12, %s3507_s3 }
  0x32   : > { %p2546_p2 = pnand %p2544_p1, %p2517_p13 }
  0x34   : > { %p2547_p6 = pneg %p2546_p2 }
  0x36   : > { %p2552_p3 = pnand %p2550_p10, %p2547_p6 }
  0x38   : > { %2555 = shalt.err (!%p2552_p3)
}
  0x39   : > { %s2556_s7 = scalar_lea.vmem %s2813_s10, 2048  ;;  %p2564_p12 = scmp.lt.s32.totalorder %s2813_s10, %s2813_s10 }
  0x3a   : > { %p2557_p5 = scmp.ne.s32.totalorder %s2813_s10, %s2556_s7  ;;  %p2565_p0 = scmp.lt.s32.totalorder %s2556_s7, %s2556_s7 }
  0x3c   : > { %p2559_p7 = pnand %p2557_p5, %p2517_p13  ;;  %p2566_p1 = por %p2565_p0, %p2564_p12 }
  0x3e   : > { %p2560_p9 = pneg %p2559_p7 }
  0x40   : > { %p2567_p2 = pnand %p2566_p1, %p2560_p9 }
  0x42   : > { %2570 = shalt.err (!%p2567_p2)
}
  0x43   : > { %2374 = dma.hbm_to_vmem [thread:$0]  (!%p2809_p11), %s3507_s3, 2048, %s2813_s10, [#allocation9], %s3512_s19, %s3512_s19, %s3513_s20  }
  0x44   : > { %s2874_s8 = sadd.s32 1, %s2709_s24   ;;  %s33_s26 = sadd.s32 1, %s2705_s23 }
  0x45   : > { %s30_s30 = ssub.s32 %s2709_s24, %s2874_s8  ;;  %p40_p13 = scmp.ne.s32.totalorder %s2705_s23, %s2701_s22 }
  0x46   : > { %p31_p6 = scmp.eq.s32.totalorder %s30_s30, 0  ;;  %p41_p10 = scmp.eq.s32.totalorder %s2709_s24, 0 }
  0x47   : > { %p3528_p3 = scmp.eq.s32.totalorder %s2779_s25, 1  ;;  %p2388_p7 = scmp.lt.s32.totalorder %s2709_s24, 2 }
  0x48   : > { %s2890_s11 = scalar_select %p31_p6, %s2705_s23, %s33_s26  }
  0x49   : > { %p2884_p5 = por %p3528_p3, %p40_p13  ;;  %p42_p9 = por %p41_p10, %p40_p13 }
  0x4a   : > { %s2893_s12 = sand.u32 1, %s2705_s23   ;;  %s2062_s13 = sshll.u32 %s2709_s24, 7 }
  0x4b   : > { %s3529_s9 = scalar_select %p2884_p5, 1, 0 }
  0x4c   : > { %s2061_s10 = sshll.u32 %s2893_s12, 3  ;;  %s3530_s0 = sld [smem:[#allocation16_spill]] }
  0x4d   : > { %s242_s7 = scalar_lea.vmem [#allocation2], %s2061_s10  ;;  %p2904_p11 = pnand %p2388_p7, %p42_p9 }
  0x4e   : > { %s249_s17 = sshll.u32 %s242_s7, 4  ;;  %s2063_s26 = sshll.u32 %s2893_s12, 7  ;;  %s2902_s17 = int_to_ptr.vmem [resolvable:$true] %s249_s17 }
  0x4f   : > { %s239_s19 = scalar_lea.sflag [#allocation3], %s2893_s12  ;;  %p2573_p0 = pneg %p2904_p11 }
  0x52   : > { %s2900_s16 = scalar_lea.hbm %s3530_s0, %s2062_s13  ;;  %s2576_s15 = scalar_lea.hbm %s3530_s0, 256 }
  0x53   : > { %s2571_s14 = scalar_lea.hbm %s2900_s16, 128  ;;  %p2577_p13 = scmp.lt.u32.totalorder %s2900_s16, %s3530_s0 }
  0x54   : > { %p2572_p12 = scmp.ne.s32.totalorder %s2900_s16, %s2571_s14  ;;  %p2578_p6 = scmp.lt.u32.totalorder %s2576_s15, %s2571_s14 }
  0x55   : > { %p2580_p3 = scmp.lt.u32.totalorder %s2571_s14, %s2900_s16 }
  0x56   : > { %p2574_p1 = pnand %p2573_p0, %p2572_p12  ;;  %p2579_p10 = por %p2578_p6, %p2577_p13 }
  0x58   : > { %p2575_p2 = pneg %p2574_p1  ;;  %p2581_p7 = por %p2580_p3, %p2579_p10 }
  0x5a   : > { %p2582_p9 = pnand %p2581_p7, %p2575_p2 }
  0x5c   : > { %2585 = shalt.err (!%p2582_p9)
}
  0x5d   : > { %s2586_s30 = scalar_lea.vmem %s2902_s17, 128  ;;  %s2715_s10 = smov [#allocation2]  }
  0x5e   : > { %p2587_p12 = scmp.ne.s32.totalorder %s2902_s17, %s2586_s30  ;;  %s2591_s13 = sshll.u32 %s2715_s10, 4  ;;  %s2592_s13 = int_to_ptr.vmem [resolvable:$false] %s2591_s13 }
  0x5f   : > { %s2593_s20 = scalar_lea.vmem %s2592_s13, 256  ;;  %p2594_p4 = scmp.lt.s32.totalorder %s2902_s17, %s2592_s13 }
  0x60   : > { %p2589_p1 = pnand %p2587_p12, %p2573_p0  ;;  %p2595_p13 = scmp.lt.s32.totalorder %s2593_s20, %s2586_s30 }
  0x62   : > { %p2590_p5 = pneg %p2589_p1  ;;  %p2596_p6 = por %p2595_p13, %p2594_p4 }
  0x64   : > { %p2597_p10 = pnand %p2596_p6, %p2590_p5 }
  0x66   : > { %2600 = shalt.err (!%p2597_p10)
}
  0x67   : > { %2378 = dma.hbm_to_vmem [thread:$0]  (!%p2904_p11), %s2900_s16, 128, %s2902_s17, %s239_s19  }
  0x68   : > { %s260_s14 = scalar_lea.vmem [#allocation5], %s2063_s26  ;;  %s2089_s7 = sshll.u32 %s2709_s24, 11 }
  0x69   : > { %s268_s15 = sshll.u32 %s260_s14, 4  ;;  %s2944_s13 = scalar_lea.hbm %s3505_s1, %s2089_s7  ;;  %s2938_s15 = int_to_ptr.vmem [resolvable:$true] %s268_s15 }
  0x6a   : > { %s3532_s20 = sand.u32 1, %s2709_s24   ;;  %s2601_s2 = scalar_lea.hbm %s2944_s13, 2048 }
  0x6b   : > { %s2948_s0 = scalar_lea.sflag [#allocation6], %s3532_s20  ;;  %p2602_p4 = scmp.ne.s32.totalorder %s2944_s13, %s2601_s2 }
  0x6c   : > { %s2606_s16 = scalar_lea.hbm %s3505_s1, 4096  ;;  %p2607_p3 = scmp.lt.u32.totalorder %s2944_s13, %s3505_s1 }
  0x6d   : > { %p2604_p5 = pnand %p2602_p4, %p2573_p0  ;;  %p2608_p7 = scmp.lt.u32.totalorder %s2606_s16, %s2601_s2 }
  0x6e   : > { %p2610_p12 = scmp.lt.u32.totalorder %s2601_s2, %s2944_s13 }
  0x6f   : > { %p2605_p2 = pneg %p2604_p5  ;;  %p2609_p9 = por %p2608_p7, %p2607_p3 }
  0x71   : > { %p2611_p1 = por %p2610_p12, %p2609_p9 }
  0x73   : > { %p2612_p13 = pnand %p2611_p1, %p2605_p2 }
  0x75   : > { %2615 = shalt.err (!%p2612_p13)
}
  0x76   : > { %s2616_s14 = scalar_lea.vmem %s2938_s15, 2048  ;;  %s2716_s7 = smov [#allocation5]  }
  0x77   : > { %p2617_p6 = scmp.ne.s32.totalorder %s2938_s15, %s2616_s14  ;;  %s2621_s10 = sshll.u32 %s2716_s7, 4  ;;  %s2622_s10 = int_to_ptr.vmem [resolvable:$false] %s2621_s10 }
  0x78   : > { %s2623_s30 = scalar_lea.vmem %s2622_s10, 4096  ;;  %p2624_p5 = scmp.lt.s32.totalorder %s2938_s15, %s2622_s10 }
  0x79   : > { %p2619_p10 = pnand %p2617_p6, %p2573_p0  ;;  %p2625_p3 = scmp.lt.s32.totalorder %s2623_s30, %s2616_s14 }
  0x7b   : > { %p2620_p4 = pneg %p2619_p10  ;;  %p2626_p7 = por %p2625_p3, %p2624_p5 }
  0x7d   : > { %p2627_p9 = pnand %p2626_p7, %p2620_p4 }
  0x7f   : > { %2630 = shalt.err (!%p2627_p9)
}
  0x80   : > { %s3533_s2 = smov 8   ;;  %s3534_s20 = smov 128  }
  0x81   : > { %2381 = dma.hbm_to_vmem [thread:$0]  (!%p2904_p11), %s2944_s13, 2048, %s2938_s15, %s2948_s0, %s3534_s20, %s3534_s20, %s3533_s2  }
  0x82   : > { %280 = sbr.rel (%p2798_p8) target bundleno = 1494 (0x5d6), region = 44  ;;  %s2980_s19 = sand.u32 (!%p2798_p8), 1, %s2701_s22  }
  0x83   : > { %s2068_s12 = sshll.u32 (!%p2798_p8), %s2980_s19, 3  ;;  %s283_s16 = scalar_lea.sflag (!%p2798_p8), [#allocation3], %s2980_s19 }
  0x84   : > { %s2986_s18 = scalar_lea.vmem (!%p2798_p8), [#allocation2], %s2068_s12  ;;  %p3535_p0 = scmp.ne.s32.totalorder (!%p2798_p8), %s3523_s27, 0 }
  0x89   : > { %2676 = dma.done.wait (%p3535_p0), %s283_s16, 128  }
  0x8a   : > { %2678 = vsyncadd (%p3535_p0), %s283_s16, 4294967168  ;;  %s291_s0 = sand.u32 1, %s2779_s25   ;;  %s2069_s29 = sshll.u32 %s2980_s19, 7 }
  0x8b   : > { %s292_s15 = scalar_lea.sflag [#allocation6], %s291_s0  ;;  %s2994_s13 = scalar_lea.vmem [#allocation5], %s2069_s29 }
  0x8c   : > { %2680 = dma.done.wait (%p3535_p0), %s292_s15, 2048  }
  0x8d   : > { %2682 = vsyncadd (%p3535_p0), %s292_s15, 4294965248  ;;  %p3536_p8 = scmp.eq.s32.totalorder %s2779_s25, 0 }
  0x8f   : > { %2684 = dma.done.wait (%p3536_p8), [#allocation6], 1024   ;;  %p3537_p11 = pmov %p3536_p8 }
  0x90   : > { %p3538_p2 = pmov %p3536_p8 }
  0x91   : > { %2686 = vsyncadd (%p3537_p11), [#allocation6], 4294966272 }
  0x92   : > { %2688 = dma.done.wait (%p3538_p2), [#allocation9], 2048   ;;  %p3539_p12 = pmov %p3538_p2 }
  0x93   : > { %v3516_v0 = vmov 0.0|0.0   ;;  %vm2718_vm0 = vmmov 0   ;;  %v3518_v1 = vmov 0.0   ;;  %v355_v2 = vld [vmem:[#allocation8] sm:$0xff]  ;;  %v356_v3 = vld [vmem:[#allocation8 + $0x8] sm:$0xff]  ;;  %v357_v4 = vld [vmem:[#allocation8 + $0x10] sm:$0xff] }
  0x94   : > { %2690 = vsyncadd (%p3539_p12), [#allocation9], 4294965248  ;;  %2318 = vmatprep.subr.bf16.mxu1 %v3516_v0  ;;  %2227 = vmatprep.mubr.msk.f32.mxu1 %vm2718_vm0, %v3518_v1  ;;  %v2286_v5 = vpack.c.bf16 %v356_v3, %v355_v2  ;;  %v358_v6 = vld [vmem:[#allocation8 + $0x18] sm:$0xff]  ;;  %v359_v7 = vld [vmem:[#allocation8 + $0x20] sm:$0xff]  ;;  %vm531_vm1 = vcmask 523264   ;;  %v610_v3 = vlaneseq  ;;  %vm809_vm2 = vcmask 130112  }
  0x95   : > { %v2290_v8 = vpack.c.bf16 %v358_v6, %v357_v4  ;;  %v360_v9 = vld [vmem:[#allocation8 + $0x28] sm:$0xff]  ;;  %v516_v10 = vld [vmem:[#allocation7] sm:$0xff]  ;;  %v518_v13 = vld [vmem:[#allocation7 + $0x10] sm:$0xff]  ;;  %v2720_v63 = vmov 1966171168   ;;  %vm874_vm3 = vcmask 1041409  }
  0x96   : > { %v517_v11 = vld [vmem:[#allocation7 + $0x8] sm:$0xff]  ;;  %2287 = vmatprep.subr.bf16.mxu0 %v2286_v5  ;;  %v519_v14 = vld [vmem:[#allocation7 + $0x18] sm:$0xff]  ;;  %v2294_v15 = vpack.c.bf16 %v360_v9, %v359_v7  ;;  %v361_v16 = vld [vmem:[#allocation8 + $0x30] sm:$0xff]  ;;  %v608_v2 = vunpack.c.l.s4 %v2720_v63  ;;  %vm876_vm4 = vcmask 1042434   ;;  %vm878_vm5 = vcmask 1043459   ;;  %s2085_s7 = sshll.u32 %s2779_s25, 7 }
  0x97   : > { %v2319_v12 = vpack.c.bf16 %v517_v11, %v516_v10  ;;  %2289 = vmatpush3.bf16.msra.mxu0 %v2286_v5  ;;  %v2322_v17 = vpack.c.bf16 %v519_v14, %v518_v13  ;;  %v362_v18 = vld [vmem:[#allocation8 + $0x38] sm:$0xff]  ;;  %v520_v19 = vld [vmem:[#allocation7 + $0x20] sm:$0xff]  ;;  %v521_v20 = vld [vmem:[#allocation7 + $0x28] sm:$0xff]  ;;  %v3092_v5 = vshrl.u32 %v610_v3, 7  ;;  %vm880_vm6 = vcmask 1044484   ;;  %s336_s10 = scalar_lea.vmem [#allocation10], %s2068_s12  ;;  %s3459_s16 = scalar_lea.hbm %s3510_s6, %s2085_s7 }
  0x98   : > { %2291 = vmatprep.subr.bf16.mxu0 %v2290_v8  ;;  %v363_v21 = vld [vmem:[#allocation8 + $0x40] sm:$0xff]  ;;  %v364_v22 = vld [vmem:[#allocation8 + $0x48] sm:$0xff]  ;;  %v522_v23 = vld [vmem:[#allocation7 + $0x30] sm:$0xff]  ;;  %v2298_v26 = vpack.c.bf16 %v362_v18, %v361_v16  ;;  %v2325_v27 = vpack.c.bf16 %v521_v20, %v520_v19  ;;  %v609_v4 = vunpack.c.0.s8 %v608_v2  ;;  %vm882_vm7 = vcmask 1045509   ;;  %s1944_s30 = sshll.u32 %s336_s10, 4  ;;  %s1931_s25 = scalar_lea.sflag [#allocation4], %s2980_s19  ;;  %s3461_s30 = int_to_ptr.vmem [resolvable:$true] %s1944_s30 }
  0x99   : > { %2320 = vmatpush3.bf16.msra.mxu1 %v2319_v12  ;;  %v523_v24 = vld [vmem:[#allocation7 + $0x38] sm:$0xff]  ;;  %v338_v25 = vld [vmem:[%s2994_s13] sm:$0xff]  ;;  %v3014_v28 = vld [vmem:[%s2994_s13 + $0x10] sm:$0xff]  ;;  %v2302_v40 = vpack.c.bf16 %v364_v22, %v363_v21  ;;  %v3099_v14 = vsub.s32 0, %v3092_v5  ;;  %vm884_vm8 = vcmask 1046534   ;;  %vm886_vm9 = vcmask 1047559  }
  0x9a   : > { %2321 = vmatprep.subr.bf16.mxu1 %v3516_v0  ;;  %v3017_v29 = vld [vmem:[%s2994_s13 + $0x18] sm:$0xff]  ;;  %v3020_v30 = vld [vmem:[%s2994_s13 + $0x20] sm:$0xff]  ;;  %2187 = vmatprep.mubr.f32.mxu0 %v338_v25  ;;  %v3026_v32 = vld [vmem:[%s2994_s13 + $0x28] sm:$0xff]  ;;  %v2328_v45 = vpack.c.bf16 %v523_v24, %v522_v23  ;;  %vm889_vm10 = vcmask 130048   ;;  %p3550_p13 = scmp.ne.s32.totalorder %s3529_s9, 0  ;;  %s2722_s12 = smov [#allocation10]  }
  0x9b   : > { %2293 = vmatpush3.bf16.msra.mxu0 %v2290_v8  ;;  %v3029_v33 = vld [vmem:[%s2994_s13 + $0x30] sm:$0xff]  ;;  %v3032_v34 = vld [vmem:[%s2994_s13 + $0x38] sm:$0xff]  ;;  %v3039_v37 = vld [vmem:[%s2994_s13 + $0x40] sm:$0xff]  ;;  %v612_v8 = vsub.s32 %v609_v4, %v3092_v5  ;;  %s2635_s0 = sshll.u32 %s2722_s12, 4  ;;  %s2636_s0 = int_to_ptr.vmem [resolvable:$false] %s2635_s0 }
  0x9c   : > { %2295 = vmatprep.subr.bf16.mxu0 %v2294_v15  ;;  %v3042_v38 = vld [vmem:[%s2994_s13 + $0x48] sm:$0xff]  ;;  %v3045_v39 = vld [vmem:[%s2994_s13 + $0x50] sm:$0xff]  ;;  %v3050_v42 = vld [vmem:[%s2994_s13 + $0x58] sm:$0xff]  ;;  %s2637_s29 = scalar_lea.vmem %s2636_s0, 256  ;;  %p2638_p4 = scmp.lt.s32.totalorder %s3461_s30, %s2636_s0 }
  0x9d   : > { %2323 = vmatpush3.bf16.msra.mxu1 %v2322_v17  ;;  %v3053_v43 = vld [vmem:[%s2994_s13 + $0x60] sm:$0xff]  ;;  %v3056_v44 = vld [vmem:[%s2994_s13 + $0x68] sm:$0xff]  ;;  %v3063_v48 = vld [vmem:[%s2994_s13 + $0x70] sm:$0xff] }
  0x9e   : > { %2324 = vmatprep.subr.bf16.mxu1 %v3516_v0  ;;  %v3066_v49 = vld [vmem:[%s2994_s13 + $0x78] sm:$0xff]  ;;  %v365_v50 = vld [vmem:[#allocation8 + $0x50] sm:$0xff]  ;;  %v339_v53 = vld [vmem:[%s2994_s13 + $0x8] sm:$0xff] }
  0x9f   : > { %2297 = vmatpush3.bf16.msra.mxu0 %v2294_v15  ;;  %v366_v51 = vld [vmem:[#allocation8 + $0x58] sm:$0xff]  ;;  %v2331_v56 = vpack.c.bf16 %v339_v53, %v338_v25  ;;  %v367_v57 = vld [vmem:[#allocation8 + $0x60] sm:$0xff]  ;;  %v368_v58 = vld [vmem:[#allocation8 + $0x68] sm:$0xff] }
  0xa0   : > { %2299 = vmatprep.subr.bf16.mxu0 %v2298_v26  ;;  %v2306_v54 = vpack.c.bf16 %v366_v51, %v365_v50  ;;  %v354_v55 = vld [vmem:[%s2986_s18] sm:$0xff]  ;;  %v2310_v59 = vpack.c.bf16 %v368_v58, %v367_v57  ;;  %s2631_s18 = scalar_lea.vmem %s3461_s30, 128 }
  0xa1   : > { %2326 = vmatpush3.bf16.msra.mxu1 %v2325_v27  ;;  %v369_v60 = vld [vmem:[#allocation8 + $0x70] sm:$0xff]  ;;  %v370_v61 = vld [vmem:[#allocation8 + $0x78] sm:$0xff]  ;;  %p2632_p1 = scmp.ne.s32.totalorder %s3461_s30, %s2631_s18  ;;  %p2639_p5 = scmp.lt.s32.totalorder %s2637_s29, %s2631_s18 }
  0xa2   : > { %2327 = vmatprep.subr.bf16.mxu1 %v3516_v0  ;;  %v2314_v62 = vpack.c.bf16 %v370_v61, %v369_v60  ;;  %v2073_v6 = vld [vmem:[%s3508_s4] ss:$0 sm:$0xff] }
  0xa3   : > { %2301 = vmatpush3.bf16.msra.mxu0 %v2298_v26  ;;  %v3108_v57 = vld [vmem:[%s3509_s5] ss:$0 sm:$0xff]  ;;  %p2633_p6 = pnand %p2632_p1, %p3550_p13  ;;  %p2640_p3 = por %p2639_p5, %p2638_p4 }
  0xa4   : > { %2303 = vmatprep.subr.bf16.mxu0 %v2302_v40 }
  0xa5   : > { %2329 = vmatpush3.bf16.msra.mxu1 %v2328_v45  ;;  %p2634_p10 = pneg %p2633_p6 }
  0xa6   : > { %2330 = vmatprep.subr.bf16.mxu1 %v3516_v0 }
  0xa7   : > { %2305 = vmatpush3.bf16.msra.mxu0 %v2302_v40  ;;  %p2641_p7 = pnand %p2640_p3, %p2634_p10 }
  0xa8   : > { %2228 = vmatmul.mubr.msk.f32.vlgmr.msra.gmra.mrb[0].mxu1 %vm531_vm1, %v354_v55  ;;  %2307 = vmatprep.subr.bf16.mxu0 %v2306_v54 }
  0xa9   : > { %2332 = vmatpush3.bf16.msra.mxu1 %v2331_v56  ;;  %2234 = vmatprep.mubr.msk.f32.mxu1 %vm2718_vm0, %v3518_v1 }
  0xaa   : > { %2333 = vmatprep.subr.bf16.mxu1 %v3516_v0 }
  0xab   : > { %2309 = vmatpush3.bf16.msra.mxu0 %v2306_v54 }
  0xac   : > { %2311 = vmatprep.subr.bf16.mxu0 %v2310_v59 }
  0xaf   : > { %2313 = vmatpush3.bf16.msra.mxu0 %v2310_v59 }
  0xb0   : > { %2315 = vmatprep.subr.bf16.mxu0 %v2314_v62 }
  0xb3   : > { %2317 = vmatpush3.bf16.msra.mxu0 %v2314_v62 }
  0xb6   : > { %2188 = vmatmul.mubr.f32.vlgmr.msra.gmra.mrb[0].mxu0 %v339_v53 }
  0xb7   : > { %2190 = vmatprep.mubr.f32.mxu0 %v3014_v28 }
  0xba   : > { %2191 = vmatmul.mubr.f32.gmra.mrb[2].mxu0 %v3017_v29 }
  0xbb   : > { %2193 = vmatprep.mubr.f32.mxu0 %v3020_v30 }
  0xbe   : > { %2194 = vmatmul.mubr.f32.gmra.mrb[4].mxu0 %v3026_v32 }
  0xbf   : > { %2196 = vmatprep.mubr.f32.mxu0 %v3029_v33 }
  0xc2   : > { %2197 = vmatmul.mubr.f32.gmra.mrb[6].mxu0 %v3032_v34 }
  0xc3   : > { %2199 = vmatprep.mubr.f32.mxu0 %v3039_v37 }
  0xc6   : > { %2200 = vmatmul.mubr.f32.gmra.mrb[8].mxu0 %v3042_v38 }
  0xc7   : > { %2202 = vmatprep.mubr.f32.mxu0 %v3045_v39 }
  0xca   : > { %2203 = vmatmul.mubr.f32.gmra.mrb[10].mxu0 %v3050_v42 }
  0xcb   : > { %2205 = vmatprep.mubr.f32.mxu0 %v3053_v43 }
  0xce   : > { %2206 = vmatmul.mubr.f32.gmra.mrb[12].mxu0 %v3056_v44 }
  0xcf   : > { %2208 = vmatprep.mubr.f32.mxu0 %v3063_v48 }
  0xd2   : > { %2209 = vmatmul.mubr.f32.gmra.mrb[14].mxu0 %v3066_v49 }
 0x17b   : > { %v601_v7 = vpop.f32.mrb[0].mxu1 }
 0x17c   : > { %v602_v9 = vadd.f32 %v2073_v6, %v601_v7  ;;  %v2229_v10 = vpop.f32.mrb[1].mxu1 }
 0x17e   : > { %v613_v11 = vrot.slane %v602_v9, %v612_v8  ;;  %v606_v22 = vcombine.high %v602_v9, %v602_v9 }
 0x180   : > { %v621_v12 = vcombine.high %v613_v11, %v613_v11  ;;  %v629_v13 = vrot.slane %v613_v11, %v612_v8  ;;  %v620_v40 = vrot.slane %v606_v22, %v612_v8 }
 0x182   : > { %v658_v15 = vrot.slane %v629_v13, %v3099_v14  ;;  %v643_v16 = vrot.slane %v621_v12, %v612_v8  ;;  %v651_v23 = vcombine.high %v629_v13, %v629_v13  ;;  %v636_v58 = vrot.slane %v620_v40, %v612_v8 }
 0x183   : > { %v622_v59 = vcombine.high %v620_v40, %v620_v40 }
 0x184   : > { %v662_v20 = vrot.slane %v643_v16, %v3099_v14  ;;  %v666_v45 = vrot.slane %v651_v23, %v3099_v14  ;;  %v653_v50 = vcombine.high %v643_v16, %v643_v16  ;;  %v674_v7 = vrot.slane %v636_v58, %v3099_v14 }
 0x185   : > { %v650_v9 = vrot.slane %v622_v59, %v612_v8 }
 0x186   : > { %v670_v56 = vrot.slane %v653_v50, %v3099_v14 }
 0x189   : > { %v2189_v17 = vpop.f32.mrb[0].mxu0 }
 0x18a   : > { %v696_v18 = vadd.f32 %v2189_v17, %v658_v15  ;;  %v437_v19 = vpop.f32.mrb[1].mxu0 }
 0x18b   : > { %v695_v21 = vadd.f32 %v658_v15, %v437_v19  ;;  %v678_v19 = vrot.slane %v650_v9, %v3099_v14 }
 0x18c   : > { %2435 = vtanh.f32 %v696_v18 }
 0x18d   : > { %v2192_v24 = vpop.f32.mrb[2].mxu0  ;;  %2437 = vtanh.f32 %v695_v21 }
 0x18e   : > { %v698_v25 = vadd.f32 %v2192_v24, %v662_v20  ;;  %v447_v26 = vpop.f32.mrb[3].mxu0 }
 0x18f   : > { %v697_v27 = vadd.f32 %v662_v20, %v447_v26  ;;  %v652_v20 = vcombine.high %v636_v58, %v636_v58 }
 0x190   : > { %2439 = vtanh.f32 %v698_v25 }
 0x191   : > { %v2195_v51 = vpop.f32.mrb[4].mxu0  ;;  %2441 = vtanh.f32 %v697_v27  ;;  %v682_v27 = vrot.slane %v652_v20, %v3099_v14 }
 0x192   : > { %v700_v53 = vadd.f32 %v2195_v51, %v666_v45  ;;  %v457_v54 = vpop.f32.mrb[5].mxu0 }
 0x193   : > { %v699_v55 = vadd.f32 %v666_v45, %v457_v54  ;;  %v654_v45 = vcombine.high %v650_v9, %v650_v9 }
 0x195   : > { %2443 = vtanh.f32 %v699_v55  ;;  %v2198_v60 = vpop.f32.mrb[6].mxu0  ;;  %v686_v59 = vrot.slane %v654_v45, %v3099_v14 }
 0x196   : > { %v2436_v61 = vpop.eup %2435  ;;  %2445 = vtanh.f32 %v700_v53  ;;  %v702_v62 = vadd.f32 %v2198_v60, %v670_v56  ;;  %v467_v63 = vpop.f32.mrb[7].mxu0 }
 0x197   : > { %v701_v2 = vadd.f32 %v670_v56, %v467_v63  ;;  %v735_v4 = vmul.f32 %v2436_v61, %v3108_v57  ;;  %v2438_v6 = vpop.eup %2437 }
 0x198   : > { %v734_v16 = vmul.f32 %v2438_v6, %v3108_v57 }
 0x199   : > { %2447 = vtanh.f32 %v701_v2  ;;  %752 = vadd.xlane.f32.xlu0 %v735_v4  ;;  %v2201_v10 = vpop.f32.mrb[8].mxu0 }
 0x19a   : > { %v2440_v11 = vpop.eup %2439  ;;  %2449 = vtanh.f32 %v702_v62  ;;  %v704_v12 = vadd.f32 %v2201_v10, %v674_v7  ;;  %v477_v13 = vpop.f32.mrb[9].mxu0 }
 0x19b   : > { %v703_v15 = vadd.f32 %v674_v7, %v477_v13  ;;  %v737_v17 = vmul.f32 %v2440_v11, %v3108_v57  ;;  %v2442_v18 = vpop.eup %2441 }
 0x19c   : > { %v736_v25 = vmul.f32 %v2442_v18, %v3108_v57 }
 0x19d   : > { %2451 = vtanh.f32 %v703_v15  ;;  %750 = vadd.xlane.f32.xlu0 %v734_v16  ;;  %756 = vadd.xlane.f32.xlu1 %v737_v17  ;;  %v2204_v8 = vpop.f32.mrb[10].mxu0 }
 0x19e   : > { %2453 = vtanh.f32 %v704_v12  ;;  %v706_v21 = vadd.f32 %v2204_v8, %v678_v19  ;;  %v487_v22 = vpop.f32.mrb[11].mxu0 }
 0x19f   : > { %v2444_v23 = vpop.eup %2443  ;;  %v705_v24 = vadd.f32 %v678_v19, %v487_v22 }
 0x1a0   : > { %v2446_v26 = vpop.eup %2445  ;;  %v738_v40 = vmul.f32 %v2444_v23, %v3108_v57 }
 0x1a1   : > { %2455 = vtanh.f32 %v705_v24  ;;  %754 = vadd.xlane.f32.xlu1 %v736_v25  ;;  %v2207_v50 = vpop.f32.mrb[12].mxu0  ;;  %v739_v56 = vmul.f32 %v2446_v26, %v3108_v57 }
 0x1a2   : > { %2457 = vtanh.f32 %v706_v21  ;;  %v708_v51 = vadd.f32 %v2207_v50, %v682_v27  ;;  %758 = vadd.xlane.f32.xlu0 %v738_v40  ;;  %v497_v53 = vpop.f32.mrb[13].mxu0  ;;  %v799_v50 = vand.u32 127, %v610_v3 }
 0x1a3   : > { %v2448_v54 = vpop.eup %2447  ;;  %v707_v55 = vadd.f32 %v682_v27, %v497_v53 }
 0x1a4   : > { %v2450_v58 = vpop.eup %2449  ;;  %v740_v60 = vmul.f32 %v2448_v54, %v3108_v57  ;;  %v804_v53 = vadd.s32 4294967288, %v799_v50 }
 0x1a5   : > { %2459 = vtanh.f32 %v707_v55  ;;  %760 = vadd.xlane.f32.xlu1 %v739_v56  ;;  %v2210_v61 = vpop.f32.mrb[14].mxu0  ;;  %v741_v6 = vmul.f32 %v2450_v58, %v3108_v57  ;;  %v3152_v55 = vsub.s32 %v799_v50, %v3092_v5 }
 0x1a6   : > { %2461 = vtanh.f32 %v708_v51  ;;  %v710_v62 = vadd.f32 %v2210_v61, %v686_v59  ;;  %762 = vadd.xlane.f32.xlu0 %v740_v60  ;;  %v507_v63 = vpop.f32.mrb[15].mxu0  ;;  %v3157_v58 = vsub.s32 %v804_v53, %v3092_v5 }
 0x1a7   : > { %v2452_v2 = vpop.eup %2451  ;;  %v709_v4 = vadd.f32 %v686_v59, %v507_v63 }
 0x1a8   : > { %v2454_v7 = vpop.eup %2453  ;;  %v742_v9 = vmul.f32 %v2452_v2, %v3108_v57 }
 0x1a9   : > { %2463 = vtanh.f32 %v709_v4  ;;  %764 = vadd.xlane.f32.xlu1 %v741_v6  ;;  %v743_v11 = vmul.f32 %v2454_v7, %v3108_v57 }
 0x1aa   : > { %2465 = vtanh.f32 %v710_v62  ;;  %766 = vadd.xlane.f32.xlu0 %v742_v9 }
 0x1ab   : > { %v2456_v10 = vpop.eup %2455 }
 0x1ac   : > { %v2458_v12 = vpop.eup %2457  ;;  %v744_v13 = vmul.f32 %v2456_v10, %v3108_v57 }
 0x1ad   : > { %768 = vadd.xlane.f32.xlu1 %v743_v11  ;;  %v745_v16 = vmul.f32 %v2458_v12, %v3108_v57 }
 0x1ae   : > { %770 = vadd.xlane.f32.xlu0 %v744_v13 }
 0x1af   : > { %v2460_v15 = vpop.eup %2459 }
 0x1b0   : > { %v2462_v17 = vpop.eup %2461  ;;  %v746_v18 = vmul.f32 %v2460_v15, %v3108_v57 }
 0x1b1   : > { %772 = vadd.xlane.f32.xlu1 %v745_v16  ;;  %v747_v20 = vmul.f32 %v2462_v17, %v3108_v57 }
 0x1b2   : > { %774 = vadd.xlane.f32.xlu0 %v746_v18 }
 0x1b3   : > { %v2464_v19 = vpop.eup %2463 }
 0x1b4   : > { %v2466_v8 = vpop.eup %2465  ;;  %v748_v21 = vmul.f32 %v2464_v19, %v3108_v57 }
 0x1b5   : > { %776 = vadd.xlane.f32.xlu1 %v747_v20  ;;  %v749_v22 = vmul.f32 %v2466_v8, %v3108_v57 }
 0x1b6   : > { %778 = vadd.xlane.f32.xlu0 %v748_v21 }
 0x1b9   : > { %780 = vadd.xlane.f32.xlu1 %v749_v22 }
 0x226   : > { %v3130_v23 = vpop.xlane.xlu0 %752 }
 0x227   : > { %v808_v7 = vrot.slane %v3130_v23, %v3157_v58 }
 0x22a   : > { %v3132_v24 = vpop.xlane.xlu0 %750  ;;  %v3134_v25 = vpop.xlane.xlu1 %756 }
 0x22b   : > { %v803_v61 = vrot.slane %v3132_v24, %v3152_v55  ;;  %v818_v62 = vrot.slane %v3134_v25, %v3157_v58 }
 0x22d   : > { %v810_v16 = vsel %vm809_vm2, %v808_v7, %v803_v61 }
 0x22e   : > { %v3136_v26 = vpop.xlane.xlu1 %754 }
 0x22f   : > { %v3138_v27 = vpop.xlane.xlu0 %758  ;;  %v814_v59 = vrot.slane %v3136_v26, %v3152_v55 }
 0x230   : > { %v823_v4 = vrot.slane %v3138_v27, %v3152_v55 }
 0x231   : > { %v819_v9 = vsel %vm809_vm2, %v818_v62, %v814_v59 }
 0x232   : > { %v3140_v40 = vpop.xlane.xlu1 %760  ;;  %v875_v20 = vsel %vm874_vm3, %v819_v9, %v810_v16 }
 0x233   : > { %v3142_v45 = vpop.xlane.xlu0 %762  ;;  %v827_v3 = vrot.slane %v3140_v40, %v3157_v58 }
 0x234   : > { %v832_v10 = vrot.slane %v3142_v45, %v3152_v55 }
 0x235   : > { %v828_v12 = vsel %vm809_vm2, %v827_v3, %v823_v4 }
 0x236   : > { %v3145_v51 = vpop.xlane.xlu1 %764  ;;  %v877_v50 = vsel %vm876_vm4, %v828_v12, %v875_v20  ;;  %v2721_v12 = vmov 0  }
 0x237   : > { %v3147_v57 = vpop.xlane.xlu0 %766  ;;  %v836_v63 = vrot.slane %v3145_v51, %v3157_v58  ;;  %2434 = vset.pattern.permute.xlu0 %v2721_v12  ;;  %2433 = vset.pattern.permute.xlu1 %v2721_v12 }
 0x238   : > { %v841_v13 = vrot.slane %v3147_v57, %v3152_v55 }
 0x239   : > { %v837_v17 = vsel %vm809_vm2, %v836_v63, %v832_v10 }
 0x23a   : > { %v3149_v54 = vpop.xlane.xlu1 %768  ;;  %v879_v59 = vsel %vm878_vm5, %v837_v17, %v877_v50 }
 0x23b   : > { %v3154_v56 = vpop.xlane.xlu0 %770  ;;  %v845_v6 = vrot.slane %v3149_v54, %v3157_v58 }
 0x23c   : > { %v850_v18 = vrot.slane %v3154_v56, %v3152_v55 }
 0x23d   : > { %v846_v8 = vsel %vm809_vm2, %v845_v6, %v841_v13  ;;  %v900_v13 = vsub.s32 1, %v3092_v5 }
 0x23e   : > { %v3163_v60 = vpop.xlane.xlu1 %772  ;;  %v881_v4 = vsel %vm880_vm6, %v846_v8, %v879_v59 }
 0x23f   : > { %v3171_v2 = vpop.xlane.xlu0 %774  ;;  %v854_v11 = vrot.slane %v3163_v60, %v3157_v58 }
 0x240   : > { %v859_v21 = vrot.slane %v3171_v2, %v3152_v55 }
 0x241   : > { %v855_v53 = vsel %vm809_vm2, %v854_v11, %v850_v18 }
 0x242   : > { %v3187_v15 = vpop.xlane.xlu1 %776  ;;  %v883_v6 = vsel %vm882_vm7, %v855_v53, %v881_v4  ;;  %v3520_v53 = vsub.s32 6, %v3092_v5 }
 0x243   : > { %v863_v19 = vrot.slane %v3187_v15, %v3157_v58  ;;  %v3199_v22 = vpop.xlane.xlu0 %778 }
 0x244   : > { %v868_v62 = vrot.slane %v3199_v22, %v3152_v55 }
 0x245   : > { %v864_v61 = vsel %vm809_vm2, %v863_v19, %v859_v21  ;;  %v916_v19 = vsub.s32 5, %v3092_v5  ;;  %v904_v21 = vsub.s32 2, %v3092_v5 }
 0x246   : > { %v3204_v3 = vpop.xlane.xlu1 %780  ;;  %v885_v9 = vsel %vm884_vm8, %v864_v61, %v883_v6 }
 0x247   : > { %v872_v63 = vrot.slane %v3204_v3, %v3157_v58 }
 0x249   : > { %v873_v7 = vsel %vm809_vm2, %v872_v63, %v868_v62 }
 0x24a   : > { %v887_v10 = vsel %vm886_vm9, %v873_v7, %v885_v9  ;;  %v908_v7 = vsub.s32 3, %v3092_v5 }
 0x24b   : > { %v890_v11 = vsel %vm889_vm10, %v887_v10, -inf }
 0x24c   : > { %891 = vmax.xlane.f32.xlu0 %v890_v11 }
 0x2d9   : > { %v892_v16 = vpop.xlane.xlu0 %891 }
 0x2da   : > { %v897_v17 = vrot.slane %v892_v16, %v3099_v14  ;;  %v901_v18 = vrot.slane %v892_v16, %v900_v13  ;;  %v3229_v59 = vrot.slane %v892_v16, %v916_v19  ;;  %v905_v63 = vrot.slane %v892_v16, %v904_v21 }
 0x2dc   : > { %v934_v20 = vsub.f32 %v3132_v24, %v897_v17  ;;  %v935_v8 = vsub.f32 %v3130_v23, %v897_v17  ;;  %v936_v50 = vsub.f32 %v3136_v26, %v901_v18  ;;  %v937_v4 = vsub.f32 %v3134_v25, %v901_v18 }
 0x2dd   : > { %v924_v23 = vsub.s32 7, %v3092_v5  ;;  %v3237_v26 = vrot.slane %v892_v16, %v3520_v53  ;;  %v944_v6 = vsub.f32 %v3154_v56, %v3229_v59  ;;  %v938_v9 = vsub.f32 %v3138_v27, %v905_v63 }
 0x2de   : > { %v950_v61 = vmul.f32 1.442695, %v934_v20  ;;  %v952_v62 = vmul.f32 1.442695, %v935_v8  ;;  %v954_v24 = vmul.f32 1.442695, %v936_v50  ;;  %v909_v17 = vrot.slane %v892_v16, %v908_v7 }
 0x2df   : > { %v956_v10 = vmul.f32 1.442695, %v937_v4  ;;  %v925_v25 = vrot.slane %v892_v16, %v924_v23  ;;  %v946_v11 = vsub.f32 %v3171_v2, %v3237_v26  ;;  %v970_v12 = vmul.f32 1.442695, %v944_v6 }
 0x2e0   : > { %2467 = vpow2.f32 %v950_v61  ;;  %v939_v18 = vsub.f32 %v3140_v40, %v905_v63  ;;  %v958_v56 = vmul.f32 1.442695, %v938_v9  ;;  %v912_v2 = vsub.s32 4, %v3092_v5 }
 0x2e1   : > { %2469 = vpow2.f32 %v952_v62  ;;  %v948_v27 = vsub.f32 %v3199_v22, %v925_v25  ;;  %v974_v8 = vmul.f32 1.442695, %v946_v11  ;;  %v940_v61 = vsub.f32 %v3142_v45, %v909_v17 }
 0x2e2   : > { %2471 = vpow2.f32 %v954_v24  ;;  %v960_v62 = vmul.f32 1.442695, %v939_v18  ;;  %v913_v22 = vrot.slane %v892_v16, %v912_v2  ;;  %v941_v4 = vsub.f32 %v3145_v51, %v909_v17 }
 0x2e3   : > { %2473 = vpow2.f32 %v956_v10  ;;  %v978_v63 = vmul.f32 1.442695, %v948_v27  ;;  %v962_v24 = vmul.f32 1.442695, %v940_v61  ;;  %v945_v18 = vsub.f32 %v3163_v60, %v3229_v59 }
 0x2e4   : > { %2475 = vpow2.f32 %v970_v12  ;;  %v942_v9 = vsub.f32 %v3147_v57, %v913_v22  ;;  %v964_v10 = vmul.f32 1.442695, %v941_v4  ;;  %v943_v16 = vsub.f32 %v3149_v54, %v913_v22 }
 0x2e5   : > { %2477 = vpow2.f32 %v958_v56  ;;  %v947_v54 = vsub.f32 %v3187_v15, %v3237_v26 }
 0x2e6   : > { %2479 = vpow2.f32 %v974_v8  ;;  %v966_v12 = vmul.f32 1.442695, %v942_v9  ;;  %v968_v56 = vmul.f32 1.442695, %v943_v16  ;;  %v972_v8 = vmul.f32 1.442695, %v945_v18 }
 0x2e7   : > { %2481 = vpow2.f32 %v960_v62  ;;  %v949_v62 = vsub.f32 %v3204_v3, %v925_v25  ;;  %v976_v60 = vmul.f32 1.442695, %v947_v54 }
 0x2e8   : > { %2483 = vpow2.f32 %v978_v63 }
 0x2e9   : > { %2485 = vpow2.f32 %v962_v24  ;;  %v980_v63 = vmul.f32 1.442695, %v949_v62 }
 0x2ea   : > { %v3250_v20 = vpop.eup %2467  ;;  %2487 = vpow2.f32 %v964_v10 }
 0x2eb   : > { %v3253_v50 = vpop.eup %2469  ;;  %999 = vperm.xlu1 %2433, %v3250_v20   ;;  %2489 = vpow2.f32 %v966_v12 }
 0x2ec   : > { %1002 = vperm.xlu0 %2434, %v3253_v50   ;;  %v3259_v40 = vpop.eup %2471  ;;  %2491 = vpow2.f32 %v968_v56 }
 0x2ed   : > { %v3265_v6 = vpop.eup %2473  ;;  %2493 = vpow2.f32 %v972_v8 }
 0x2ee   : > { %v3268_v45 = vpop.eup %2475  ;;  %2495 = vpow2.f32 %v976_v60 }
 0x2ef   : > { %1005 = vperm.xlu1 %2433, %v3259_v40   ;;  %v3272_v11 = vpop.eup %2477  ;;  %2497 = vpow2.f32 %v980_v63 }
 0x2f0   : > { %1029 = vperm.xlu0 %2434, %v3268_v45   ;;  %v3275_v51 = vpop.eup %2479 }
 0x2f1   : > { %v3279_v17 = vpop.eup %2481 }
 0x2f2   : > { %v3282_v57 = vpop.eup %2483 }
 0x2f3   : > { %1008 = vperm.xlu1 %2433, %v3265_v6   ;;  %v3287_v27 = vpop.eup %2485 }
 0x2f4   : > { %1035 = vperm.xlu0 %2434, %v3275_v51   ;;  %v3292_v61 = vpop.eup %2487 }
 0x2f5   : > { %v3296_v59 = vpop.eup %2489 }
 0x2f6   : > { %v3299_v22 = vpop.eup %2491 }
 0x2f7   : > { %1011 = vperm.xlu1 %2433, %v3272_v11   ;;  %v3302_v15 = vpop.eup %2493 }
 0x2f8   : > { %1041 = vperm.xlu0 %2434, %v3282_v57   ;;  %v3305_v26 = vpop.eup %2495 }
 0x2f9   : > { %v3308_v3 = vpop.eup %2497 }
 0x2fb   : > { %1014 = vperm.xlu1 %2433, %v3279_v17  }
 0x2ff   : > { %1017 = vperm.xlu1 %2433, %v3287_v27  }
 0x303   : > { %1020 = vperm.xlu1 %2433, %v3292_v61  }
 0x307   : > { %1023 = vperm.xlu1 %2433, %v3296_v59  }
 0x30b   : > { %1026 = vperm.xlu1 %2433, %v3299_v22  }
 0x30f   : > { %1032 = vperm.xlu1 %2433, %v3302_v15  }
 0x313   : > { %1038 = vperm.xlu1 %2433, %v3305_v26  }
 0x317   : > { %1044 = vperm.xlu1 %2433, %v3308_v3  }
 0x36a   : > { %v1000_v25 = vpop.permute.xlu1 %999 }
 0x36b   : > { %v1003_v12 = vpop.permute.xlu0 %1002  ;;  %v1049_v46 = vrot.slane %v1000_v25, %v3152_v55 }
 0x36c   : > { %v1053_v47 = vrot.slane %v1003_v12, %v3157_v58 }
 0x36e   : > { %v1006_v4 = vpop.permute.xlu1 %1005  ;;  %v1054_v25 = vsel %vm809_vm2, %v1053_v47, %v1049_v46 }
 0x36f   : > { %v1030_v54 = vpop.permute.xlu0 %1029  ;;  %v1058_v41 = vrot.slane %v1006_v4, %v3152_v55 }
 0x370   : > { %v1094_v4 = vrot.slane %v1030_v54, %v3152_v55 }
 0x372   : > { %v1009_v24 = vpop.permute.xlu1 %1008 }
 0x373   : > { %v1062_v62 = vrot.slane %v1009_v24, %v3157_v58  ;;  %v1036_v60 = vpop.permute.xlu0 %1035 }
 0x375   : > { %v1063_v1 = vsel %vm809_vm2, %v1062_v62, %v1058_v41 }
 0x376   : > { %v1012_v9 = vpop.permute.xlu1 %1011  ;;  %v1118_v41 = vsel %vm874_vm3, %v1063_v1, %v1054_v25 }
 0x377   : > { %v1067_v35 = vrot.slane %v1012_v9, %v3152_v55 }
 0x37a   : > { %v1015_v10 = vpop.permute.xlu1 %1014 }
 0x37b   : > { %v1071_v63 = vrot.slane %v1015_v10, %v3157_v58 }
 0x37d   : > { %v1072_v10 = vsel %vm809_vm2, %v1071_v63, %v1067_v35 }
 0x37e   : > { %v1018_v16 = vpop.permute.xlu1 %1017  ;;  %v1119_v35 = vsel %vm876_vm4, %v1072_v10, %v1118_v41 }
 0x37f   : > { %v1076_v24 = vrot.slane %v1018_v16, %v3152_v55  ;;  %v1042_v16 = vpop.permute.xlu0 %1041 }
 0x382   : > { %v1021_v18 = vpop.permute.xlu1 %1020 }
 0x383   : > { %v1080_v36 = vrot.slane %v1021_v18, %v3157_v58 }
 0x385   : > { %v1081_v18 = vsel %vm809_vm2, %v1080_v36, %v1076_v24  ;;  %v1112_v36 = vrot.slane %v1042_v16, %v3152_v55 }
 0x386   : > { %v1024_v56 = vpop.permute.xlu1 %1023  ;;  %v1120_v62 = vsel %vm878_vm5, %v1081_v18, %v1119_v35 }
 0x387   : > { %v1085_v12 = vrot.slane %v1024_v56, %v3152_v55 }
 0x38a   : > { %v1027_v8 = vpop.permute.xlu1 %1026 }
 0x38b   : > { %v1089_v0 = vrot.slane %v1027_v8, %v3157_v58  ;;  %v1103_v8 = vrot.slane %v1036_v60, %v3152_v55 }
 0x38e   : > { %v1033_v52 = vpop.permute.xlu1 %1032 }
 0x38f   : > { %v1098_v31 = vrot.slane %v1033_v52, %v3157_v58  ;;  %v1090_v52 = vsel %vm809_vm2, %v1089_v0, %v1085_v12 }
 0x391   : > { %v1099_v56 = vsel %vm809_vm2, %v1098_v31, %v1094_v4 }
 0x392   : > { %v1039_v53 = vpop.permute.xlu1 %1038 }
 0x393   : > { %v1107_v9 = vrot.slane %v1039_v53, %v3157_v58  ;;  %v1121_v53 = vsel %vm880_vm6, %v1090_v52, %v1120_v62 }
 0x394   : > { %v1122_v1 = vsel %vm882_vm7, %v1099_v56, %v1121_v53 }
 0x395   : > { %v1108_v46 = vsel %vm809_vm2, %v1107_v9, %v1103_v8 }
 0x396   : > { %v1045_v47 = vpop.permute.xlu1 %1044  ;;  %v1123_v0 = vsel %vm884_vm8, %v1108_v46, %v1122_v1 }
 0x397   : > { %v1116_v54 = vrot.slane %v1045_v47, %v3157_v58 }
 0x399   : > { %v1117_v60 = vsel %vm809_vm2, %v1116_v54, %v1112_v36 }
 0x39a   : > { %v1124_v63 = vsel %vm886_vm9, %v1117_v60, %v1123_v0 }
 0x39b   : > { %v1126_v31 = vsel %vm889_vm10, %v1124_v63, 0.0 }
 0x39c   : > { %1127 = vadd.xlane.f32.xlu0 %v1126_v31 }
 0x429   : > { %v1128_v24 = vpop.xlane.xlu0 %1127 }
 0x42a   : > { %v1149_v10 = vrot.slane %v1128_v24, %v912_v2  ;;  %v1133_v12 = vrot.slane %v1128_v24, %v3099_v14  ;;  %v1161_v25 = vrot.slane %v1128_v24, %v924_v23  ;;  %v1137_v4 = vrot.slane %v1128_v24, %v900_v13 }
 0x42b   : > { %v1141_v41 = vrot.slane %v1128_v24, %v904_v21  ;;  %v1145_v13 = vrot.slane %v1128_v24, %v908_v7 }
 0x42c   : > { %2499 = vrcp.f32 %v1149_v10 }
 0x42d   : > { %2501 = vrcp.f32 %v1133_v12 }
 0x42e   : > { %2503 = vrcp.f32 %v1161_v25 }
 0x42f   : > { %2505 = vrcp.f32 %v1137_v4  ;;  %v3545_v4 = vpack.c.bf16 %v3032_v34, %v3029_v33  ;;  %v3546_v34 = vpack.c.bf16 %v3042_v38, %v3039_v37 }
 0x430   : > { %2507 = vrcp.f32 %v1141_v41 }
 0x431   : > { %2509 = vrcp.f32 %v1145_v13 }
 0x436   : > { %v2500_v18 = vpop.eup %2499 }
 0x437   : > { %v2502_v9 = vpop.eup %2501  ;;  %v1183_v8 = vmul.f32 %v2500_v18, %v3296_v59 }
 0x438   : > { %v2504_v2 = vpop.eup %2503  ;;  %v1171_v14 = vmul.f32 %v2502_v9, %v3250_v20  ;;  %v1172_v16 = vmul.f32 %v2502_v9, %v3253_v50  ;;  %v1153_v50 = vrot.slane %v1128_v24, %v916_v19 }
 0x439   : > { %1553 = vperm.xlu0 %2434, %v1183_v8   ;;  %v1192_v23 = vmul.f32 %v2504_v2, %v3282_v57  ;;  %v2506_v52 = vpop.eup %2505 }
 0x43a   : > { %1197 = vperm.xlu1 %2433, %v1171_v14   ;;  %v1174_v59 = vmul.f32 %v2506_v52, %v3259_v40  ;;  %v1175_v21 = vmul.f32 %v2506_v52, %v3265_v6  ;;  %v2508_v20 = vpop.eup %2507  ;;  %2511 = vrcp.f32 %v1153_v50  ;;  %v3540_v40 = vsub.s32 6, %v3092_v5 }
 0x43b   : > { %v1177_v35 = vmul.f32 %v2508_v20, %v3272_v11  ;;  %v1178_v57 = vmul.f32 %v2508_v20, %v3279_v17  ;;  %v2510_v56 = vpop.eup %2509  ;;  %v1184_v11 = vmul.f32 %v2500_v18, %v3299_v22 }
 0x43c   : > { %v1180_v7 = vmul.f32 %v2510_v56, %v3287_v27  ;;  %v1157_v62 = vrot.slane %v1128_v24, %v3540_v40  ;;  %v1181_v6 = vmul.f32 %v2510_v56, %v3292_v61  ;;  %v1193_v61 = vmul.f32 %v2504_v2, %v3308_v3 }
 0x43d   : > { %1820 = vperm.xlu0 %2434, %v1192_v23   ;;  %v3543_v3 = vmov 0.0|0.0   ;;  %v3544_v24 = vpack.c.bf16 %v3026_v32, %v3020_v30 }
 0x43e   : > { %1200 = vperm.xlu1 %2433, %v1172_v16   ;;  %2513 = vrcp.f32 %v1157_v62  ;;  %v3547_v16 = vpack.c.bf16 %v3050_v42, %v3045_v39 }
 0x442   : > { %1286 = vperm.xlu1 %2433, %v1174_v59  }
 0x444   : > { %v2512_v46 = vpop.eup %2511 }
 0x445   : > { %v1186_v19 = vmul.f32 %v2512_v46, %v3268_v45  ;;  %v1187_v17 = vmul.f32 %v2512_v46, %v3302_v15 }
 0x446   : > { %1289 = vperm.xlu1 %2433, %v1175_v21   ;;  %v3548_v21 = vpack.c.bf16 %v3056_v44, %v3053_v43  ;;  %v3549_v43 = vpack.c.bf16 %v3066_v49, %v3063_v48 }
 0x448   : > { %v2514_v47 = vpop.eup %2513 }
 0x449   : > { %v1189_v27 = vmul.f32 %v2514_v47, %v3275_v51  ;;  %v1190_v5 = vmul.f32 %v2514_v47, %v3305_v26  ;;  %v3541_v51 = vpack.c.bf16 %v3017_v29, %v3014_v28  ;;  %v3542_v26 = vmov 0.0  }
 0x44a   : > { %1375 = vperm.xlu1 %2433, %v1177_v35  }
 0x44e   : > { %1378 = vperm.xlu1 %2433, %v1178_v57  }
 0x452   : > { %1464 = vperm.xlu1 %2433, %v1180_v7  }
 0x456   : > { %1467 = vperm.xlu1 %2433, %v1181_v6  }
 0x45a   : > { %1556 = vperm.xlu1 %2433, %v1184_v11  }
 0x45e   : > { %1642 = vperm.xlu1 %2433, %v1186_v19  }
 0x462   : > { %1645 = vperm.xlu1 %2433, %v1187_v17  }
 0x466   : > { %1731 = vperm.xlu1 %2433, %v1189_v27  }
 0x46a   : > { %1734 = vperm.xlu1 %2433, %v1190_v5  }
 0x46e   : > { %1823 = vperm.xlu1 %2433, %v1193_v61  }
 0x4b8   : > { %v1554_v9 = vpop.permute.xlu0 %1553 }
 0x4b9   : > { %v1198_v36 = vpop.permute.xlu1 %1197  ;;  %v1561_v2 = vrot.slane %v1554_v9, %v3152_v55 }
 0x4ba   : > { %v1205_v53 = vrot.slane %v1198_v36, %v3152_v55 }
 0x4bc   : > { %v1821_v35 = vpop.permute.xlu0 %1820 }
 0x4bd   : > { %v1201_v22 = vpop.permute.xlu1 %1200  ;;  %v1828_v56 = vrot.slane %v1821_v35, %v3152_v55 }
 0x4be   : > { %v1209_v45 = vrot.slane %v1201_v22, %v3157_v58 }
 0x4c0   : > { %v1210_v54 = vsel %vm809_vm2, %v1209_v45, %v1205_v53 }
 0x4c1   : > { %2235 = vmatmul.mubr.msk.f32.vlgmr.msra.gmra.mrb[2].mxu1 %vm889_vm10, %v1210_v54  ;;  %v1287_v15 = vpop.permute.xlu1 %1286 }
 0x4c2   : > { %2335 = vmatpush3.bf16.msra.mxu1 %v3541_v51  ;;  %2241 = vmatprep.mubr.msk.f32.mxu1 %vm2718_vm0, %v3542_v26  ;;  %v1294_v60 = vrot.slane %v1287_v15, %v3152_v55 }
 0x4c3   : > { %2336 = vmatprep.subr.bf16.mxu1 %v3543_v3 }
 0x4c5   : > { %v1290_v1 = vpop.permute.xlu1 %1289 }
 0x4c6   : > { %v1298_v0 = vrot.slane %v1290_v1, %v3157_v58 }
 0x4c8   : > { %v1299_v63 = vsel %vm809_vm2, %v1298_v0, %v1294_v60 }
 0x4c9   : > { %2242 = vmatmul.mubr.msk.f32.vlgmr.msra.gmra.mrb[4].mxu1 %vm889_vm10, %v1299_v63  ;;  %v1376_v31 = vpop.permute.xlu1 %1375 }
 0x4ca   : > { %2338 = vmatpush3.bf16.msra.mxu1 %v3544_v24  ;;  %2248 = vmatprep.mubr.msk.f32.mxu1 %vm2718_vm0, %v3542_v26  ;;  %v1383_v29 = vrot.slane %v1376_v31, %v3152_v55 }
 0x4cb   : > { %2339 = vmatprep.subr.bf16.mxu1 %v3543_v3 }
 0x4cd   : > { %v1379_v28 = vpop.permute.xlu1 %1378 }
 0x4ce   : > { %v1387_v10 = vrot.slane %v1379_v28, %v3157_v58 }
 0x4d0   : > { %v1388_v12 = vsel %vm809_vm2, %v1387_v10, %v1383_v29 }
 0x4d1   : > { %2249 = vmatmul.mubr.msk.f32.vlgmr.msra.gmra.mrb[6].mxu1 %vm889_vm10, %v1388_v12  ;;  %v1465_v25 = vpop.permute.xlu1 %1464 }
 0x4d2   : > { %2341 = vmatpush3.bf16.msra.mxu1 %v3545_v4  ;;  %2255 = vmatprep.mubr.msk.f32.mxu1 %vm2718_vm0, %v3542_v26  ;;  %v1472_v32 = vrot.slane %v1465_v25, %v3152_v55 }
 0x4d3   : > { %2342 = vmatprep.subr.bf16.mxu1 %v3543_v3 }
 0x4d5   : > { %v1468_v30 = vpop.permute.xlu1 %1467 }
 0x4d6   : > { %v1476_v18 = vrot.slane %v1468_v30, %v3157_v58 }
 0x4d8   : > { %v1477_v8 = vsel %vm809_vm2, %v1476_v18, %v1472_v32 }
 0x4d9   : > { %2256 = vmatmul.mubr.msk.f32.vlgmr.msra.gmra.mrb[8].mxu1 %vm889_vm10, %v1477_v8  ;;  %v1557_v41 = vpop.permute.xlu1 %1556 }
 0x4da   : > { %v1565_v33 = vrot.slane %v1557_v41, %v3157_v58  ;;  %2344 = vmatpush3.bf16.msra.mxu1 %v3546_v34  ;;  %2262 = vmatprep.mubr.msk.f32.mxu1 %vm2718_vm0, %v3542_v26 }
 0x4db   : > { %2345 = vmatprep.subr.bf16.mxu1 %v3543_v3 }
 0x4dc   : > { %v1566_v14 = vsel %vm809_vm2, %v1565_v33, %v1561_v2 }
 0x4dd   : > { %2263 = vmatmul.mubr.msk.f32.vlgmr.msra.gmra.mrb[10].mxu1 %vm889_vm10, %v1566_v14  ;;  %v1643_v23 = vpop.permute.xlu1 %1642 }
 0x4de   : > { %2347 = vmatpush3.bf16.msra.mxu1 %v3547_v16  ;;  %2269 = vmatprep.mubr.msk.f32.mxu1 %vm2718_vm0, %v3542_v26  ;;  %v1650_v38 = vrot.slane %v1643_v23, %v3152_v55 }
 0x4df   : > { %2348 = vmatprep.subr.bf16.mxu1 %v3543_v3 }
 0x4e1   : > { %v1646_v37 = vpop.permute.xlu1 %1645 }
 0x4e2   : > { %v1654_v52 = vrot.slane %v1646_v37, %v3157_v58 }
 0x4e4   : > { %v1655_v13 = vsel %vm809_vm2, %v1654_v52, %v1650_v38 }
 0x4e5   : > { %2270 = vmatmul.mubr.msk.f32.vlgmr.msra.gmra.mrb[12].mxu1 %vm889_vm10, %v1655_v13  ;;  %v1732_v59 = vpop.permute.xlu1 %1731 }
 0x4e6   : > { %2350 = vmatpush3.bf16.msra.mxu1 %v3548_v21  ;;  %2276 = vmatprep.mubr.msk.f32.mxu1 %vm2718_vm0, %v3542_v26  ;;  %v1739_v42 = vrot.slane %v1732_v59, %v3152_v55 }
 0x4e7   : > { %2351 = vmatprep.subr.bf16.mxu1 %v3543_v3 }
 0x4e9   : > { %v1735_v39 = vpop.permute.xlu1 %1734 }
 0x4ea   : > { %v1743_v20 = vrot.slane %v1735_v39, %v3157_v58 }
 0x4ec   : > { %v1744_v50 = vsel %vm809_vm2, %v1743_v20, %v1739_v42 }
 0x4ed   : > { %2277 = vmatmul.mubr.msk.f32.vlgmr.msra.gmra.mrb[14].mxu1 %vm889_vm10, %v1744_v50  ;;  %v1824_v57 = vpop.permute.xlu1 %1823 }
 0x4ee   : > { %2353 = vmatpush3.bf16.msra.mxu1 %v3549_v43  ;;  %v1832_v44 = vrot.slane %v1824_v57, %v3157_v58  ;;  %2283 = vmatprep.mubr.msk.f32.mxu1 %vm2718_vm0, %v3542_v26 }
 0x4f0   : > { %v1833_v7 = vsel %vm809_vm2, %v1832_v44, %v1828_v56 }
 0x4f1   : > { %2284 = vmatmul.mubr.msk.f32.vlgmr.msra.gmra.mrb[16].mxu1 %vm889_vm10, %v1833_v7 }
 0x594   : > { %v1279_v40 = vpop.f32.mrb[2].mxu1 }
 0x595   : > { %v2236_v62 = vpop.f32.mrb[3].mxu1 }
 0x59c   : > { %v1368_v6 = vpop.f32.mrb[4].mxu1 }
 0x59d   : > { %v1914_v11 = vrot.slane %v1368_v6, 7  ;;  %v2243_v46 = vpop.f32.mrb[5].mxu1 }
 0x59f   : > { %v1915_v55 = vsel %vm874_vm3, %v1914_v11, %v1279_v40 }
 0x5a4   : > { %v1457_v19 = vpop.f32.mrb[6].mxu1 }
 0x5a5   : > { %v1916_v17 = vrot.slane %v1457_v19, 6  ;;  %v2250_v48 = vpop.f32.mrb[7].mxu1 }
 0x5a7   : > { %v1917_v49 = vsel %vm876_vm4, %v1916_v17, %v1915_v55 }
 0x5ac   : > { %v1546_v58 = vpop.f32.mrb[8].mxu1 }
 0x5ad   : > { %v1918_v47 = vrot.slane %v1546_v58, 5  ;;  %v2257_v27 = vpop.f32.mrb[9].mxu1 }
 0x5af   : > { %v1919_v5 = vsel %vm878_vm5, %v1918_v47, %v1917_v49 }
 0x5b0   : > { %v1635_v61 = vpop.f32.mrb[10].mxu1 }
 0x5b1   : > { %v1920_v36 = vrot.slane %v1635_v61, 4  ;;  %v2264_v22 = vpop.f32.mrb[11].mxu1 }
 0x5b3   : > { %v1921_v53 = vsel %vm880_vm6, %v1920_v36, %v1919_v5 }
 0x5b8   : > { %v1724_v45 = vpop.f32.mrb[12].mxu1 }
 0x5b9   : > { %v1922_v54 = vrot.slane %v1724_v45, 3  ;;  %v2271_v15 = vpop.f32.mrb[13].mxu1 }
 0x5bb   : > { %v1923_v51 = vsel %vm882_vm7, %v1922_v54, %v1921_v53 }
 0x5c0   : > { %v1813_v26 = vpop.f32.mrb[14].mxu1 }
 0x5c1   : > { %v1924_v3 = vrot.slane %v1813_v26, 2  ;;  %v2278_v1 = vpop.f32.mrb[15].mxu1 }
 0x5c3   : > { %v1925_v60 = vsel %vm884_vm8, %v1924_v3, %v1923_v51 }
 0x5c4   : > { %v1902_v0 = vpop.f32.mrb[16].mxu1 }
 0x5c5   : > { %v1926_v63 = vrot.slane %v1902_v0, 1  ;;  %v2285_v31 = vpop.f32.mrb[17].mxu1 }
 0x5c7   : > { %v1927_v24 = vsel %vm886_vm9, %v1926_v63, %v1925_v60 }
 0x5c8   : > { %1929 = vst [vmem:[%s336_s10] sm:$0xff] %v1927_v24 }
 0x5c9   : > { %2644 = shalt.err (!%p2641_p7)
}
 0x5ca   : > { %s2645_s19 = scalar_lea.hbm %s3459_s16, 128  ;;  %s2649_s27 = scalar_lea.hbm %s3510_s6, 256 }
 0x5cb   : > { %p2646_p9 = scmp.ne.s32.totalorder %s3459_s16, %s2645_s19  ;;  %p2650_p11 = scmp.lt.u32.totalorder %s3459_s16, %s3510_s6 }
 0x5cc   : > { %p2651_p2 = scmp.lt.u32.totalorder %s2649_s27, %s2645_s19  ;;  %p2653_p1 = scmp.lt.u32.totalorder %s2645_s19, %s3459_s16 }
 0x5cd   : > { %p2647_p0 = pnand %p2646_p9, %p3550_p13 }
 0x5ce   : > { %p2652_p12 = por %p2651_p2, %p2650_p11 }
 0x5cf   : > { %p2648_p8 = pneg %p2647_p0 }
 0x5d0   : > { %p2654_p6 = por %p2653_p1, %p2652_p12 }
 0x5d2   : > { %p2655_p10 = pnand %p2654_p6, %p2648_p8 }
 0x5d4   : > { %2658 = shalt.err (!%p2655_p10)
}
 0x5d5   : > { %2366 = dma.vmem_to_hbm [thread:$0]  (%p3550_p13), %s3461_s30, 128, %s3459_s16, %s1931_s25  }
 0x5d6 PF: > { %s1956_s14 = sand.u32 1, %s2697_s21   ;;  %p3551_p4 = scmp.ne.s32.totalorder %s3524_s28, 0 }
 0x5d7   : > { %p3552_p5 = scmp.ge.s32.totalorder %s2709_s24, 2  ;;  %s1957_s7 = scalar_lea.sflag [#allocation4], %s1956_s14 }
 0x5d9   : > { %p2383_p3 = pnand %p3552_p5, %p3551_p4 }
 0x5db   : > { %2692 = dma.done.wait (!%p2383_p3), %s1957_s7, 128  }
 0x5dc   : > { %2694 = vsyncadd (!%p2383_p3), %s1957_s7, 4294967168  ;;  %p23_p7 = scmp.ge.s32.totalorder %s2874_s8, 4   ;;  %s3553_s21 = smov %s2701_s22 }
 0x5dd   : > { %s3554_s22 = smov %s2705_s23  ;;  %s3555_s23 = smov %s2890_s11 }
 0x5de   : > { %s3556_s24 = smov %s2874_s8  ;;  %25 = sbr.rel (!%p23_p7) target bundleno = 11 (0xb), region = 110 }
 0x5e5   :  { %1962 = vsyncpa [#allocation3], 1 }
 0x5e6   :  { %1964 = vsyncpa [#allocation3 + $0x1], 1 }
 0x5e7   :  { %1965 = vsyncpa [#allocation6], 1 }
 0x5e8   :  { %1967 = vsyncpa [#allocation6 + $0x1], 1 }
 0x5e9   :  { %1968 = vsyncpa [#allocation9], 1 }
 0x5ea   :  { %1969 = vsyncpa [#allocation4], 1 }
 0x5eb   :  { %1971 = vsyncpa [#allocation4 + $0x1], 1 }

</bundles_post_ra>
